<compile_context>
chip_gen: v6e
topology: v6e:2x2x1
jax: 0.10.0
libtpu: 0.0.40
codegen_flags: <defaults>
</compile_context>

<pallas_src>
import math

import jax
import jax.numpy as jnp
from jax.experimental import pallas as pl
from jax.experimental.pallas import tpu as pltpu


def _scale_shift_kernel(x_ref, p_ref, o_ref):
    # x_ref: (TR, TW) tile; p_ref: (2, TW) with row 0 = scale, row 1 = shift.
    # The (1, TW) slices broadcast over the sublane (row) axis.
    o_ref[...] = x_ref[...] * p_ref[0:1, :] + p_ref[1:2, :]


def _round_up(x, m):
    return -(-x // m) * m


def _vmem_capacity_bytes():
    try:
        info = pltpu.get_tpu_info()
        cap = int(getattr(info, "vmem_capacity_bytes", 0) or 0)
        if cap > 0:
            return cap
    except Exception:
        pass
    return 64 << 20  # conservative default (v7x per-TensorCore VMEM)


def _choose_tiles(rows_f, W, itemsize, sublane, target_bytes):
    # Lane-axis tile: multiple of 128 (unmasked stores except possibly the very
    # last lane block), and small enough that a single sublane-row fits the
    # per-block budget even for huge W.
    max_w = max(128, (target_bytes // (sublane * itemsize)) // 128 * 128)
    tile_w = W if W <= max_w else max_w

    # Row-axis tile: as large as the budget allows, multiple of the sublane pack.
    row_bytes = max(1, tile_w * itemsize)
    if rows_f <= sublane:
        tile_rows = rows_f  # block dim == full array dim (always legal)
    else:
        tile_rows = max(sublane, (target_bytes // row_bytes) // sublane * sublane)
        # Keep at least 2 row tiles when possible so v7x can use both TensorCores.
        half = max(sublane, _round_up(-(-rows_f // 2), sublane))
        tile_rows = min(tile_rows, half, (rows_f // sublane) * sublane)

    # Prefer an even (small) grid so the parallel axis splits evenly across
    # v7x's 2 TensorCores.  Best effort only.
    n_rows = pl.cdiv(rows_f, tile_rows)
    n_w = pl.cdiv(W, tile_w)
    if (n_w % 2 == 1) and 1 < n_rows <= 16 and n_rows % 2 == 1:
        tr2 = _round_up(-(-rows_f // (n_rows + 1)), sublane)
        if sublane <= tr2 < tile_rows and pl.cdiv(rows_f, tr2) % 2 == 0:
            tile_rows = tr2
    return tile_rows, tile_w


def scale_and_shift(x, scale, shift):
    """x: (B, S, D); scale, shift: (D,)  ->  (B, S, D) computing x*scale + shift."""
    B, S, D = x.shape
    rows = B * S
    itemsize = jnp.dtype(x.dtype).itemsize
    sublane = max(8, 32 // itemsize)  # 8 f32 / 16 bf16 / 32 int8

    # Lane-dense folding: W = lcm(D, 128) so the output last dim is a multiple
    # of 128.  scale/shift are tiled `group` times to preserve the broadcast.
    group = 128 // math.gcd(D, 128)
    if group > 1 and rows % group != 0 and D >= 128:
        # Wide-D ragged case: a pad copy of x costs more HBM traffic than a
        # single masked lane block per row, so skip the fold.
        group = 1
    W = D * group

    x2 = x.reshape(rows, D)
    pad_rows = _round_up(rows, group) - rows
    if pad_rows:  # only when rows % group != 0 (rare)
        x2 = jnp.pad(x2, ((0, pad_rows), (0, 0)))
    rows_p = rows + pad_rows
    rows_f = rows_p // group
    x_slab = x2.reshape(rows_f, W)  # free reshape (contiguous)

    # Single packed (2, W) operand: row 0 = scale, row 1 = shift.
    params = jnp.stack(
        [jnp.tile(scale, group), jnp.tile(shift, group)]
    ).astype(x.dtype)

    vmem_cap = _vmem_capacity_bytes()
    target_bytes = (6 << 20) if vmem_cap <= (64 << 20) else (8 << 20)
    hard_cap = min(vmem_cap * 5 // 8, 48 << 20)  # ~40 MiB on v7x, 48 MiB on v5e/v6e

    tile_rows, tile_w = _choose_tiles(rows_f, W, itemsize, sublane, target_bytes)
    n_rows = pl.cdiv(rows_f, tile_rows)
    n_w = pl.cdiv(W, tile_w)

    # 2 double-buffered blocks (x + out) + double-buffered params + headroom.
    block_bytes = tile_rows * tile_w * itemsize
    param_bytes = 2 * tile_w * itemsize
    vmem_bytes = 4 * block_bytes + 4 * param_bytes + (2 << 20)
    vmem_bytes = int(min(max(vmem_bytes, 8 << 20), hard_cap))

    out_slab = pl.pallas_call(
        _scale_shift_kernel,
        out_shape=jax.ShapeDtypeStruct((rows_f, W), x.dtype),
        grid_spec=pltpu.PrefetchScalarGridSpec(
            num_scalar_prefetch=0,
            grid=(n_rows, n_w),
            in_specs=[
                pl.BlockSpec((tile_rows, tile_w), lambda i, j: (i, j)),
                pl.BlockSpec((2, tile_w), lambda i, j: (0, j)),
            ],
            out_specs=pl.BlockSpec((tile_rows, tile_w), lambda i, j: (i, j)),
        ),
        compiler_params=pltpu.CompilerParams(
            dimension_semantics=("parallel", "parallel"),
            vmem_limit_bytes=vmem_bytes,
        ),
    )(x_slab, params)

    out2 = out_slab.reshape(rows_p, D)
    if pad_rows:
        out2 = out2[:rows]
    return out2.reshape(B, S, D)


if __name__ == "__main__":
    # Small shapes consistent with the module: batch=2, seq=8, dims=32.
    B, S, D = 2, 8, 32

    key = jax.random.PRNGKey(0)
    kx, ks, kb = jax.random.split(key, 3)

    x = jax.random.normal(kx, (B, S, D), dtype=jnp.float32)
    # TODO(synk): the module's __init__ never creates self.scale/self.shift; the
    # forward implies per-feature (dims,) parameters, supplied here as inputs.
    scale = 1.0 + 0.1 * jax.random.normal(ks, (D,), dtype=jnp.float32)
    shift = 0.1 * jax.random.normal(kb, (D,), dtype=jnp.float32)

    out = jax.block_until_ready(scale_and_shift(x, scale, shift))

    ref = x * scale + shift
    assert out.shape == ref.shape
    assert jnp.allclose(out, ref, atol=1e-6, rtol=1e-6)

    print("KERNEL_OK")
</pallas_src>

<mosaic_0001>
module attributes {stable_mosaic.version = 11 : i64} {
  func.func @_scale_shift_kernel(%arg0: i32, %arg1: i32, %arg2: memref<4x128xf32, #tpu.memory_space<vmem>>, %arg3: memref<2x128xf32, #tpu.memory_space<vmem>>, %arg4: memref<4x128xf32, #tpu.memory_space<vmem>>) attributes {dimension_semantics = [#tpu.dimension_semantics<parallel>, #tpu.dimension_semantics<parallel>], iteration_bounds = array<i64: 1, 1>, scalar_prefetch = 0 : i64, scratch_operands = 0 : i64, tpu.core_type = #tpu.core_type<tc>, window_params = [{transform_indices = @transform_0, window_bounds = array<i64: 4, 128>}, {transform_indices = @transform_1, window_bounds = array<i64: 2, 128>}, {transform_indices = @transform_2, window_bounds = array<i64: 4, 128>}]} {
    %c0 = arith.constant 0 : index
    %c0_0 = arith.constant 0 : index
    %0 = vector.load %arg2[%c0, %c0_0] : memref<4x128xf32, #tpu.memory_space<vmem>>, vector<4x128xf32>
    %c0_1 = arith.constant 0 : index
    %c0_2 = arith.constant 0 : index
    %1 = vector.load %arg3[%c0_1, %c0_2] : memref<2x128xf32, #tpu.memory_space<vmem>>, vector<1x128xf32>
    %2 = vector.broadcast %1 : vector<1x128xf32> to vector<4x128xf32>
    %3 = arith.mulf %0, %2 : vector<4x128xf32>
    %c1 = arith.constant 1 : index
    %c0_3 = arith.constant 0 : index
    %4 = vector.load %arg3[%c1, %c0_3] : memref<2x128xf32, #tpu.memory_space<vmem>>, vector<1x128xf32>
    %5 = vector.broadcast %4 : vector<1x128xf32> to vector<4x128xf32>
    %6 = arith.addf %3, %5 : vector<4x128xf32>
    %c0_4 = arith.constant 0 : index
    %c0_5 = arith.constant 0 : index
    %7 = vector.load %arg4[%c0_4, %c0_5] : memref<4x128xf32, #tpu.memory_space<vmem>>, vector<4x128xf32>
    tpu.vector_store %arg4[%c0_4, %c0_5], %6 {strides = array<i32>} : memref<4x128xf32, #tpu.memory_space<vmem>>, vector<4x128xf32>,
    return
  }
  func.func @transform_0(%arg0: i32, %arg1: i32) -> (i32, i32) {
    %c0_i32 = arith.constant 0 : i32
    return %arg0, %arg1 : i32, i32
  }
  func.func @transform_1(%arg0: i32, %arg1: i32) -> (i32, i32) {
    %c0_i32 = arith.constant 0 : i32
    %c0_i32_0 = arith.constant 0 : i32
    return %c0_i32, %arg1 : i32, i32
  }
  func.func @transform_2(%arg0: i32, %arg1: i32) -> (i32, i32) {
    %c0_i32 = arith.constant 0 : i32
    return %arg0, %arg1 : i32, i32
  }
}

</mosaic_0001>

<bundles_post_ra>
// kernel: tpu_custom_call.1
= control target key start
LH: loop header
LB: loop body
LE: loop exit
PB: predicated region body
PF: predicated region fallthrough
CT: control target
= control target key end

     0   :  { %7 = vsyncpa [#allocation3], 0  ;;  %s164_s0 = inlined_call_operand.hbm [shape: f32[4,128], index: 0, kind: input, shape index: {}]   ;;  %s165_s1 = inlined_call_operand.hbm [shape: f32[2,128], index: 1, kind: input, shape index: {}]   ;;  %s166_s2 = inlined_call_operand.hbm [shape: f32[4,128], index: 2, kind: output, shape index: {}]  }
   0x1   :  { %8 = vsyncpa [#allocation6], 0 }
   0x2   :  { %9 = vsyncpa [#allocation4], 0  ;;  %s137_s9 = smov [#allocation2]   ;;  %s138_s11 = smov [#allocation5]  }
   0x3   :  { %s16_s10 = sshll.u32 %s137_s9, 4  ;;  %s26_s12 = sshll.u32 %s138_s11, 4  ;;  %s17_s10 = int_to_ptr.vmem [resolvable:$true] %s16_s10  ;;  %s27_s12 = int_to_ptr.vmem [resolvable:$true] %s26_s12 }
   0x4   :  { %s79_s13 = scalar_lea.vmem %s17_s10, 64  ;;  %p84_p1 = scmp.lt.s32.totalorder %s17_s10, %s17_s10 }
   0x5   :  { %p80_p0 = scmp.ne.s32.totalorder %s17_s10, %s79_s13  ;;  %p85_p2 = scmp.lt.s32.totalorder %s79_s13, %s79_s13 }
   0x7   :  { %p86_p3 = por %p85_p2, %p84_p1 }
   0x9   :  { %p87_p4 = pnand %p86_p3, %p80_p0 }
   0xb   :  { %90 = shalt.err (!%p87_p4)
}
   0xc   :  { %19 = dma.hbm_to_vmem [thread:$0]  %s164_s0, 64, %s17_s10, [#allocation3]  }
   0xd   :  { %s99_s16 = scalar_lea.vmem %s27_s12, 32  ;;  %p104_p6 = scmp.lt.s32.totalorder %s27_s12, %s27_s12 }
   0xe   :  { %p100_p5 = scmp.ne.s32.totalorder %s27_s12, %s99_s16  ;;  %p105_p7 = scmp.lt.s32.totalorder %s99_s16, %s99_s16 }
  0x10   :  { %p106_p8 = por %p105_p7, %p104_p6 }
  0x12   :  { %p107_p9 = pnand %p106_p8, %p100_p5 }
  0x14   :  { %110 = shalt.err (!%p107_p9)
}
  0x15   :  { %29 = dma.hbm_to_vmem [thread:$0]  %s165_s1, 32, %s27_s12, [#allocation6]  }
  0x16   :  { %131 = dma.done.wait [#allocation3], 64  }
  0x17   :  { %132 = vsyncadd [#allocation3], 4294967232 }
  0x18   :  { %133 = dma.done.wait [#allocation6], 32  }
  0x19   :  { %134 = vsyncadd [#allocation6], 4294967264  ;;  %s139_s19 = smov [#allocation7]   ;;  %v36_v0 = vld [vmem:[#allocation2] sm:$0xf] }
  0x1a   :  { %s56_s20 = sshll.u32 %s139_s19, 4  ;;  %v66_v1 = vld [vmem:[#allocation5] ss:$0 sm:$0xff]  ;;  %v67_v2 = vld [vmem:[#allocation5 + $0x1] ss:$0 sm:$0xff]  ;;  %s57_s20 = int_to_ptr.vmem [resolvable:$true] %s56_s20 }
  0x1b   :  { %v42_v3 = vmul.f32 %v66_v1, %v36_v0  ;;  %s111_s0 = scalar_lea.vmem %s57_s20, 64  ;;  %p116_p11 = scmp.lt.s32.totalorder %s57_s20, %s57_s20 }
  0x1c   :  { %p112_p10 = scmp.ne.s32.totalorder %s57_s20, %s111_s0  ;;  %p117_p12 = scmp.lt.s32.totalorder %s111_s0, %s111_s0 }
  0x1d   :  { %v48_v4 = vadd.f32 %v67_v2, %v42_v3 }
  0x1e   :  { %p118_p13 = por %p117_p12, %p116_p11 }
  0x1f   :  { %49 = vst [vmem:[#allocation7] sm:$0xf] %v48_v4 }
  0x20   :  { %p119_p0 = pnand %p118_p13, %p112_p10 }
  0x22   :  { %122 = shalt.err (!%p119_p0)
}
  0x23   :  { %59 = dma.vmem_to_hbm [thread:$0]  %s57_s20, 64, %s166_s2, [#allocation4]  }
  0x24   :  { %135 = dma.done.wait [#allocation4], 64  }
  0x25   :  { %136 = vsyncadd [#allocation4], 4294967232 }
  0x26   :  { %63 = vsyncpa [#allocation3], 1 }
  0x27   :  { %64 = vsyncpa [#allocation6], 1 }
  0x28   :  { %65 = vsyncpa [#allocation4], 1 }

</bundles_post_ra>
